<compile_context>
chip_gen: v7x
topology: tpu7x:2x2x1
jax: 0.10.0
libtpu: 0.0.40
codegen_flags: <defaults>
</compile_context>

<pallas_src>
import functools

import jax
import jax.numpy as jnp
from jax.experimental import pallas as pl
from jax.experimental.pallas import tpu as pltpu


def _round_up(n, m):
    return ((n + m - 1) // m) * m


def _matmul_kernel(x_ref, b_ref, o_ref, acc_ref):
    """One (tm, tn) output tile, accumulated over the K grid axis."""
    k = pl.program_id(2)

    @pl.when(k == 0)
    def _init():
        acc_ref[...] = jnp.zeros_like(acc_ref)

    # bf16 MXU matmul with f32 accumulation.
    acc_ref[...] += jnp.dot(x_ref[...], b_ref[...],
                            preferred_element_type=jnp.float32)

    @pl.when(k == pl.num_programs(2) - 1)
    def _finalize():
        o_ref[...] = acc_ref[...]          # both f32: no cast needed


def _masked_matmul(xm_bf16, beta_bf16, *, tm=512, tn=512, tk=512):
    """Tiled (batch, K) @ (K, N) -> (batch, N) in f32, operands bf16."""
    batch, input_dim = xm_bf16.shape
    _, output_dim = beta_bf16.shape

    m_pad = _round_up(max(batch, 8), 8)
    k_pad = _round_up(input_dim, 128)
    n_pad = _round_up(output_dim, 128)
    tm = min(tm, m_pad)
    tk = min(tk, k_pad)
    tn = min(tn, n_pad)
    m_pad = _round_up(m_pad, tm)
    k_pad = _round_up(k_pad, tk)
    n_pad = _round_up(n_pad, tn)

    xp = jnp.pad(xm_bf16, ((0, m_pad - batch), (0, k_pad - input_dim)))
    bp = jnp.pad(beta_bf16, ((0, k_pad - input_dim), (0, n_pad - output_dim)))

    grid = (m_pad // tm, n_pad // tn, k_pad // tk)

    # Double-buffered bf16 x/beta tiles + double-buffered f32 out tile +
    # f32 accumulator, with 2x margin.
    est = 2 * 2 * tm * tk + 2 * 2 * tk * tn + 2 * 4 * tm * tn + 4 * tm * tn
    vmem_limit = int(min(max(2 * est, 32 * 1024 * 1024), 100 * 1024 * 1024))

    cost = pl.CostEstimate(
        flops=2 * m_pad * k_pad * n_pad,
        transcendentals=0,
        bytes_accessed=2 * (m_pad * k_pad + k_pad * n_pad) + 4 * m_pad * n_pad,
    )

    out = pl.pallas_call(
        _matmul_kernel,
        out_shape=jax.ShapeDtypeStruct((m_pad, n_pad), jnp.float32),
        grid_spec=pltpu.PrefetchScalarGridSpec(
            num_scalar_prefetch=0,
            grid=grid,
            in_specs=[
                pl.BlockSpec((tm, tk), lambda i, j, k: (i, k)),
                pl.BlockSpec((tk, tn), lambda i, j, k: (k, j)),
            ],
            out_specs=pl.BlockSpec((tm, tn), lambda i, j, k: (i, j)),
            scratch_shapes=[pltpu.VMEM((tm, tn), jnp.float32)],
        ),
        compiler_params=pltpu.CompilerParams(
            dimension_semantics=("parallel", "parallel", "arbitrary"),
            vmem_limit_bytes=vmem_limit,
        ),
        cost_estimate=cost,
    )(xp, bp)

    return out[:batch, :output_dim]


def draw_prior_params(key, input_dim, output_dim, prob):
    """Fresh per-call draws (module semantics); split key -> beta + mask."""
    kb, km = jax.random.split(key)
    # TODO(synk): the torch RNG bit-stream itself is not reproduced; draws come
    # from jax.random (same distribution, different bits).
    beta = jax.random.normal(kb, (input_dim, output_dim), dtype=jnp.float32)
    mask = jax.random.bernoulli(km, p=prob, shape=(input_dim,)).astype(jnp.float32)
    return beta, mask


def ss_layer_prior_forward(x, key, scale, prob, output_dim,
                           *, tm=512, tn=512, tk=512):
    """(x * Bernoulli(prob) mask) @ (randn(K, N) * scale).

    x   : (batch, input_dim) float32
    key : jax PRNG key — new key per call gives the fresh beta/mask draw the
          PyTorch module performs on every forward.
    """
    batch, input_dim = x.shape
    beta, mask = draw_prior_params(key, input_dim, output_dim, prob)
    # Fold mask, scale and the bf16 cast into the small x operand ONCE here;
    # mathematically identical to (x*mask) @ (scale*beta), keeps the kernel's
    # hot path pure MXU work.
    xm = (x.astype(jnp.float32) * mask[None, :] * scale).astype(jnp.bfloat16)
    return _masked_matmul(xm, beta.astype(jnp.bfloat16), tm=tm, tn=tn, tk=tk)


if __name__ == "__main__":
    # Small, lane-aligned demo shapes; small tiles so a real (1, 2, 4) grid is
    # exercised.  Production sizes should use the defaults (tm=tn=tk=512).
    batch = 8
    input_dim = 512
    output_dim = 256
    scale = 0.1
    prob = 0.5
    tm, tn, tk = 512, 128, 128

    root = jax.random.PRNGKey(0)
    kx, kcall = jax.random.split(root)
    x = jax.random.normal(kx, (batch, input_dim), dtype=jnp.float32)

    out = ss_layer_prior_forward(x, kcall, scale, prob, output_dim,
                                 tm=tm, tn=tn, tk=tk)
    out = jax.block_until_ready(out)
    assert out.shape == (batch, output_dim)

    # Reference: same draws (same key), same bf16-operand / f32-accumulation
    # contraction in plain JAX.
    beta, mask = draw_prior_params(kcall, input_dim, output_dim, prob)
    xm = (x * mask[None, :] * scale).astype(jnp.bfloat16)
    ref = jnp.dot(xm, beta.astype(jnp.bfloat16),
                  preferred_element_type=jnp.float32)
    assert jnp.allclose(out, ref, atol=2e-2, rtol=2e-2), (
        float(jnp.max(jnp.abs(out - ref))))

    print("KERNEL_OK")
</pallas_src>

<mosaic_0001>
module attributes {stable_mosaic.version = 11 : i64} {
  func.func @_matmul_kernel(%arg0: i32, %arg1: i32, %arg2: i32, %arg3: memref<8x128xbf16, #tpu.memory_space<vmem>>, %arg4: memref<128x128xbf16, #tpu.memory_space<vmem>>, %arg5: memref<8x128xf32, #tpu.memory_space<vmem>>, %arg6: memref<8x128xf32, #tpu.memory_space<vmem>>) attributes {dimension_semantics = [#tpu.dimension_semantics<parallel>, #tpu.dimension_semantics<parallel>, #tpu.dimension_semantics<arbitrary>], iteration_bounds = array<i64: 1, 2, 4>, scalar_prefetch = 0 : i64, scratch_operands = 1 : i64, tpu.core_type = #tpu.core_type<tc>, window_params = [{transform_indices = @transform_0, window_bounds = array<i64: 8, 128>}, {transform_indices = @transform_1, window_bounds = array<i64: 128, 128>}, {transform_indices = @transform_2, window_bounds = array<i64: 8, 128>}]} {
    %c0_i32 = arith.constant 0 : i32
    %0 = arith.cmpi eq, %arg2, %c0_i32 : i32
    %1 = arith.extui %0 : i1 to i32
    %c0_i32_0 = arith.constant 0 : i32
    %2 = arith.cmpi ne, %1, %c0_i32_0 : i32
    scf.if %2 {
      %cst_9 = arith.constant 0.000000e+00 : f32
      %12 = vector.broadcast %cst_9 : f32 to vector<8x128xf32>
      %c0_10 = arith.constant 0 : index
      %c0_11 = arith.constant 0 : index
      %13 = vector.load %arg6[%c0_10, %c0_11] : memref<8x128xf32, #tpu.memory_space<vmem>>, vector<8x128xf32>
      tpu.vector_store %arg6[%c0_10, %c0_11], %12 {strides = array<i32>} : memref<8x128xf32, #tpu.memory_space<vmem>>, vector<8x128xf32>,
    } else {
    }
    %c0 = arith.constant 0 : index
    %c0_1 = arith.constant 0 : index
    %3 = vector.load %arg6[%c0, %c0_1] : memref<8x128xf32, #tpu.memory_space<vmem>>, vector<8x128xf32>
    %c0_2 = arith.constant 0 : index
    %c0_3 = arith.constant 0 : index
    %4 = vector.load %arg3[%c0_2, %c0_3] : memref<8x128xbf16, #tpu.memory_space<vmem>>, vector<8x128xbf16>
    %c0_4 = arith.constant 0 : index
    %c0_5 = arith.constant 0 : index
    %5 = vector.load %arg4[%c0_4, %c0_5] : memref<128x128xbf16, #tpu.memory_space<vmem>>, vector<128x128xbf16>
    %cst = arith.constant dense<0.000000e+00> : vector<8x128xf32>
    %6 = tpu.matmul %4, %5, %cst {dimension_numbers = #tpu.dot_dimension_numbers<[1], [0], [0], [1], [0, 0, 1, 1], [], []>} : vector<8x128xbf16>, vector<128x128xbf16>, vector<8x128xf32> -> vector<8x128xf32>
    %7 = arith.addf %3, %6 : vector<8x128xf32>
    %c0_6 = arith.constant 0 : index
    %c0_7 = arith.constant 0 : index
    %8 = vector.load %arg6[%c0_6, %c0_7] : memref<8x128xf32, #tpu.memory_space<vmem>>, vector<8x128xf32>
    tpu.vector_store %arg6[%c0_6, %c0_7], %7 {strides = array<i32>} : memref<8x128xf32, #tpu.memory_space<vmem>>, vector<8x128xf32>,
    %c3_i32 = arith.constant 3 : i32
    %9 = arith.cmpi eq, %arg2, %c3_i32 : i32
    %10 = arith.extui %9 : i1 to i32
    %c0_i32_8 = arith.constant 0 : i32
    %11 = arith.cmpi ne, %10, %c0_i32_8 : i32
    scf.if %11 {
      %c0_9 = arith.constant 0 : index
      %c0_10 = arith.constant 0 : index
      %12 = vector.load %arg6[%c0_9, %c0_10] : memref<8x128xf32, #tpu.memory_space<vmem>>, vector<8x128xf32>
      %c0_11 = arith.constant 0 : index
      %c0_12 = arith.constant 0 : index
      %13 = vector.load %arg5[%c0_11, %c0_12] : memref<8x128xf32, #tpu.memory_space<vmem>>, vector<8x128xf32>
      tpu.vector_store %arg5[%c0_11, %c0_12], %12 {strides = array<i32>} : memref<8x128xf32, #tpu.memory_space<vmem>>, vector<8x128xf32>,
    } else {
    }
    return
  }
  func.func @transform_0(%arg0: i32, %arg1: i32, %arg2: i32) -> (i32, i32) {
    %c0_i32 = arith.constant 0 : i32
    return %arg0, %arg2 : i32, i32
  }
  func.func @transform_1(%arg0: i32, %arg1: i32, %arg2: i32) -> (i32, i32) {
    %c0_i32 = arith.constant 0 : i32
    return %arg2, %arg1 : i32, i32
  }
  func.func @transform_2(%arg0: i32, %arg1: i32, %arg2: i32) -> (i32, i32) {
    %c0_i32 = arith.constant 0 : i32
    return %arg0, %arg1 : i32, i32
  }
}

</mosaic_0001>

<bundles_post_ra>
// kernel: tpu_custom_call.1
= control target key start
LH: loop header
LB: loop body
LE: loop exit
PB: predicated region body
PF: predicated region fallthrough
CT: control target
= control target key end

     0   :  { %s1275_s0 = inlined_call_operand.hbm [shape: bf16[8,512], index: 0, kind: input, shape index: {}]   ;;  %s1276_s1 = inlined_call_operand.hbm [shape: bf16[512,256], index: 1, kind: input, shape index: {}]   ;;  %s1277_s2 = inlined_call_operand.hbm [shape: f32[8,256], index: 2, kind: output, shape index: {}]  }
   0x1   :  { %1285 = sst [smem:[#allocation18_spill]] %s1275_s0 }
   0x2   :  { %7 = vsyncpa [#allocation4], 0 }
   0x3   :  { %9 = vsyncpa [#allocation4 + $0x1], 0 }
   0x4   :  { %10 = vsyncpa [#allocation7], 0 }
   0x5   :  { %12 = vsyncpa [#allocation7 + $0x1], 0 }
   0x6   :  { %13 = vsyncpa [#allocation5], 0 }
   0x7   :  { %15 = vsyncpa [#allocation5 + $0x1], 0  ;;  %s917_s9 = smov 0   ;;  %s919_s10 = smov 0  }
   0x8   :  { %s921_s11 = smov 0   ;;  %s923_s12 = smov 0  }
   0x9   :  { %s925_s13 = smov 0   ;;  %s927_s14 = smov 0  }
   0xa   :  { %s929_s15 = smov 0   ;;  %s931_s16 = smov 0  }
   0xb   :  { %s933_s17 = smov 0   ;;  %s935_s18 = smov 0  }
   0xc   :  { %s937_s19 = smov 0   ;;  %s939_s20 = smov 0  }
   0xd   :  { %s941_s21 = smov 0   ;;  %s943_s22 = smov 0  }
   0xe LB: > { %1286 = sst [smem:[#allocation12_spill]] %s871_s17  ;;  %s478_s23 = sadd.s32 4294967295, %s891_s22   ;;  %s891_s22 = sphi %s943_s22, %s21_s22   ;;  %s887_s21 = sphi %s941_s21, %s1326_s21   ;;  %s883_s20 = sphi %s939_s20, %s1325_s20   ;;  %s879_s19 = sphi %s937_s19, %s1313_s19   ;;  %s875_s18 = sphi %s935_s18, %s1324_s18   ;;  %s871_s17 = sphi %s933_s17, %s1312_s17   ;;  %s867_s16 = sphi %s931_s16, %s1323_s16   ;;  %s863_s15 = sphi %s929_s15, %s1322_s15   ;;  %s859_s14 = sphi %s927_s14, %s1321_s14   ;;  %s855_s13 = sphi %s925_s13, %s1320_s13   ;;  %s851_s12 = sphi %s923_s12, %s1319_s12   ;;  %s847_s11 = sphi %s921_s11, %s1318_s11   ;;  %s843_s10 = sphi %s919_s10, %s1317_s10   ;;  %s839_s9 = sphi %s917_s9, %s1316_s9  }
   0xf   : > { %1287 = sst [smem:[#allocation13_spill]] %s887_s21  ;;  %s479_s24 = sadd.s32 4294967294, %s891_s22  }
  0x10   : > { %s33_s25 = sadd.s32 1, %s883_s20  ;;  %s36_s26 = sadd.s32 1, %s887_s21 }
  0x11   : > { %p34_p0 = scmp.ge.s32.totalorder %s33_s25, 4  ;;  %s49_s27 = sadd.s32 1, %s871_s17 }
  0x12   : > { %p56_p1 = scmp.ne.s32.totalorder %s871_s17, %s867_s16  ;;  %p57_p2 = scmp.eq.s32.totalorder %s891_s22, 0 }
  0x13   : > { %s1328_s25 = smov (%p34_p0, %s33_s25), 0  ;;  %s1330_s26 = smov (!%p34_p0, %s36_s26), %s887_s21 }
  0x14   : > { %1288 = sst [smem:[#allocation14_spill]] %s1328_s25  ;;  %s45_s28 = ssub.s32 %s883_s20, %s1328_s25 }
  0x15   : > { %p1000_p3 = por %p57_p2, %p56_p1  ;;  %p38_p4 = scmp.ge.s32.totalorder %s1330_s26, 2 }
  0x16   : > { %p47_p5 = scmp.eq.s32.totalorder %s45_s28, 0  ;;  %p62_p6 = scmp.ne.s32.totalorder %s867_s16, %s863_s15 }
  0x17   : > { %p1007_p7 = scmp.eq.s32.totalorder %s478_s23, 0  ;;  %s1332_s26 = smov (%p38_p4, %s1330_s26), 0 }
  0x18   : > { %1291 = sst [smem:[#allocation15_spill]] %s1332_s26  ;;  %s73_s5 = ssub.s32 %s887_s21, %s1332_s26 }
  0x19   : > { %s1014_s3 = scalar_select %p47_p5, %s871_s17, %s49_s27  }
  0x1a   : > { %p1018_p8 = por %p1007_p7, %p62_p6  ;;  %s74_s6 = sor.u32 %s73_s5, %s45_s28 }
  0x1b   : > { %1292 = sst [smem:[#allocation16_spill]] %s1014_s3  ;;  %s77_s7 = sadd.s32 1, %s859_s14 }
  0x1c   : > { %s1293_s4 = scalar_select %p1018_p8, 1, 0 }
  0x1d   : > { %p75_p9 = scmp.eq.s32.totalorder %s74_s6, 0  ;;  %p84_p10 = scmp.ne.s32.totalorder %s859_s14, %s855_s13 }
  0x1e   : > { %p90_p11 = scmp.ne.s32.totalorder %s855_s13, %s851_s12  ;;  %p103_p12 = scmp.eq.s32.totalorder %s73_s5, 0 }
  0x1f   : > { %s1030_s8 = scalar_select %p75_p9, %s859_s14, %s77_s7  }
  0x20   : > { %p1034_p13 = por %p84_p10, %p57_p2  ;;  %p1040_p0 = por %p90_p11, %p1007_p7 }
  0x21   : > { %1294 = sst [smem:[#allocation17_spill]] %s1030_s8  ;;  %s105_s28 = sadd.s32 1, %s847_s11 }
  0x22   : > { %s1296_s27 = scalar_select %p1040_p0, 1, 0 }
  0x23   : > { %p115_p1 = scmp.ne.s32.totalorder %s847_s11, %s843_s10  ;;  %p116_p4 = scmp.eq.s32.totalorder %s478_s23, 7 }
  0x24   : > { %s1048_s6 = scalar_select %p103_p12, %s847_s11, %s105_s28  }
  0x25   : > { %p121_p5 = scmp.ne.s32.totalorder %s843_s10, %s839_s9  ;;  %p122_p2 = scmp.eq.s32.totalorder %s479_s24, 7 }
  0x26   : > { %p1056_p6 = por %p116_p4, %p115_p1  ;;  %p553_p7 = scmp.lt.s32.totalorder %s891_s22, 8 }
  0x27   : > { %p1061_p9 = por %p122_p2, %p121_p5  ;;  %s142_s5 = sand.u32 1, %s871_s17  }
  0x28   : > { %s1297_s12 = scalar_select %p1056_p6, 1, 0 }
  0x29   : > { %s1298_s30 = scalar_select %p1061_p9, 1, 0 }
  0x2a   : > { %s482_s7 = sshll.u32 %s142_s5, 2  ;;  %s483_s28 = sshll.u32 %s883_s20, 6 }
  0x2b   : > { %s1299_s0 = sld [smem:[#allocation18_spill]]  ;;  %s146_s24 = scalar_lea.vmem [#allocation3], %s482_s7 }
  0x2c   : > { %s155_s3 = sshll.u32 %s146_s24, 4  ;;  %p1076_p10 = pnand %p553_p7, %p1000_p3  ;;  %s1072_s3 = int_to_ptr.vmem [resolvable:$true] %s155_s3 }
  0x2d   : > { %p1083_p11 = pnand %p553_p7, %p1034_p13  ;;  %s143_s26 = scalar_lea.sflag [#allocation4], %s142_s5 }
  0x2e   : > { %p683_p4 = pneg %p1076_p10 }
  0x31   : > { %s1070_s23 = scalar_lea.hbm %s1299_s0, %s483_s28  ;;  %s686_s24 = scalar_lea.hbm %s1299_s0, 256 }
  0x32   : > { %s681_s7 = scalar_lea.hbm %s1070_s23, 64  ;;  %p687_p13 = scmp.lt.u32.totalorder %s1070_s23, %s1299_s0 }
  0x33   : > { %p682_p1 = scmp.ne.s32.totalorder %s1070_s23, %s681_s7  ;;  %p688_p2 = scmp.lt.u32.totalorder %s686_s24, %s681_s7 }
  0x34   : > { %p690_p12 = scmp.lt.u32.totalorder %s681_s7, %s1070_s23 }
  0x35   : > { %p684_p3 = pnand %p683_p4, %p682_p1  ;;  %p689_p7 = por %p688_p2, %p687_p13 }
  0x37   : > { %p685_p5 = pneg %p684_p3  ;;  %p691_p9 = por %p690_p12, %p689_p7 }
  0x39   : > { %p692_p6 = pnand %p691_p9, %p685_p5 }
  0x3b   : > { %695 = shalt.err (!%p692_p6)
}
  0x3c   : > { %s696_s5 = scalar_lea.vmem %s1072_s3, 64  ;;  %s893_s29 = smov [#allocation3]  }
  0x3d   : > { %p697_p1 = scmp.ne.s32.totalorder %s1072_s3, %s696_s5  ;;  %s701_s28 = sshll.u32 %s893_s29, 4  ;;  %s702_s28 = int_to_ptr.vmem [resolvable:$false] %s701_s28 }
  0x3e   : > { %s703_s17 = scalar_lea.vmem %s702_s28, 128  ;;  %p704_p8 = scmp.lt.s32.totalorder %s1072_s3, %s702_s28 }
  0x3f   : > { %p699_p3 = pnand %p697_p1, %p683_p4  ;;  %p705_p13 = scmp.lt.s32.totalorder %s703_s17, %s696_s5 }
  0x41   : > { %p700_p0 = pneg %p699_p3  ;;  %p706_p2 = por %p705_p13, %p704_p8 }
  0x43   : > { %p707_p12 = pnand %p706_p2, %p700_p0 }
  0x45   : > { %710 = shalt.err (!%p707_p12)
}
  0x46   : > { %545 = dma.hbm_to_vmem [thread:$0]  (!%p1076_p10), %s1070_s23, 64, %s1072_s3, %s143_s26  }
  0x47   : > { %p183_p6 = scmp.lt.s32.totalorder %s891_s22, 9  ;;  %s162_s7 = sand.u32 1, %s859_s14  }
  0x48   : > { %s1302_s24 = sshll.u32 %s883_s20, 5  ;;  %p1303_p9 = scmp.ge.s32.totalorder %s891_s22, 1 }
  0x49   : > { %s172_s15 = sadd.s32 %s887_s21, %s1302_s24  ;;  %s484_s8 = sshll.u32 %s162_s7, 6 }
  0x4a   : > { %p1120_p8 = pnand %p1303_p9, %p183_p6  ;;  %s487_s29 = sshll.u32 %s172_s15, 6 }
  0x4b   : > { %s1127_s0 = scalar_lea.hbm %s1276_s1, %s487_s29  ;;  %s166_s3 = scalar_lea.vmem [#allocation6], %s484_s8 }
  0x4c   : > { %s175_s23 = sshll.u32 %s166_s3, 4  ;;  %s1131_s26 = scalar_lea.sflag [#allocation7], %s162_s7  ;;  %s1129_s23 = int_to_ptr.vmem [resolvable:$true] %s175_s23 }
  0x4d   : > { %s711_s24 = scalar_lea.hbm %s1127_s0, 1024  ;;  %p713_p10 = pneg %p1083_p11 }
  0x4e   : > { %p712_p0 = scmp.ne.s32.totalorder %s1127_s0, %s711_s24  ;;  %s716_s28 = scalar_lea.hbm %s1276_s1, 8192 }
  0x4f   : > { %p717_p7 = scmp.lt.u32.totalorder %s1127_s0, %s1276_s1  ;;  %p718_p1 = scmp.lt.u32.totalorder %s716_s28, %s711_s24 }
  0x50   : > { %p714_p4 = pnand %p713_p10, %p712_p0  ;;  %p720_p13 = scmp.lt.u32.totalorder %s711_s24, %s1127_s0 }
  0x51   : > { %p719_p3 = por %p718_p1, %p717_p7 }
  0x52   : > { %p715_p5 = pneg %p714_p4 }
  0x53   : > { %p721_p2 = por %p720_p13, %p719_p3 }
  0x55   : > { %p722_p12 = pnand %p721_p2, %p715_p5 }
  0x57   : > { %725 = shalt.err (!%p722_p12)
}
  0x58   : > { %s726_s7 = scalar_lea.vmem %s1129_s23, 1024  ;;  %s894_s8 = smov [#allocation6]  }
  0x59   : > { %p727_p6 = scmp.ne.s32.totalorder %s1129_s23, %s726_s7  ;;  %s731_s3 = sshll.u32 %s894_s8, 4  ;;  %s732_s3 = int_to_ptr.vmem [resolvable:$false] %s731_s3 }
  0x5a   : > { %s733_s21 = scalar_lea.vmem %s732_s3, 2048  ;;  %p734_p4 = scmp.lt.s32.totalorder %s1129_s23, %s732_s3 }
  0x5b   : > { %p729_p9 = pnand %p727_p6, %p713_p10  ;;  %p735_p7 = scmp.lt.s32.totalorder %s733_s21, %s726_s7 }
  0x5d   : > { %p730_p0 = pneg %p729_p9  ;;  %p736_p1 = por %p735_p7, %p734_p4 }
  0x5f   : > { %p737_p3 = pnand %p736_p1, %p730_p0 }
  0x61   : > { %740 = shalt.err (!%p737_p3)
}
  0x62   : > { %s895_s24 = smov 128   ;;  %s896_s15 = smov 64  }
  0x63   : > { %s897_s29 = smov 4   ;;  %187 = sbr.rel (%p1120_p8) target bundleno = 401 (0x191), region = 28 }
  0x64   : > { %548 = dma.hbm_to_vmem [thread:$0]  (!%p1083_p11), %s1127_s0, 1024, %s1129_s23, %s1131_s26, %s895_s24, %s896_s15, %s897_s29  }
  0x65   : > { %s189_s28 = sand.u32 (!%p1120_p8), 1, %s867_s16   ;;  %p1305_p10 = scmp.ne.s32.totalorder (!%p1120_p8), %s1293_s4, 0 }
  0x66   : > { %s1162_s17 = sshll.u32 (!%p1120_p8), %s189_s28, 2  ;;  %s190_s7 = scalar_lea.sflag (!%p1120_p8), [#allocation4], %s189_s28 }
  0x67   : > { %s193_s8 = scalar_lea.vmem (!%p1120_p8), [#allocation3], %s1162_s17 }
  0x6a   : > { %826 = dma.done.wait (%p1305_p10), %s190_s7, 64  }
  0x6b   : > { %828 = vsyncadd (%p1305_p10), %s190_s7, 4294967232  ;;  %s198_s25 = sand.u32 1, %s855_s13   ;;  %p1306_p11 = scmp.ne.s32.totalorder %s1296_s27, 0 }
  0x6c   : > { %s490_s0 = sshll.u32 %s198_s25, 6  ;;  %s199_s23 = scalar_lea.sflag [#allocation7], %s198_s25 }
  0x6d   : > { %s1170_s5 = scalar_lea.vmem [#allocation6], %s490_s0 }
  0x6e   : > { %830 = dma.done.wait (%p1306_p11), %s199_s23, 1024  }
  0x6f   : > { %832 = vsyncadd (%p1306_p11), %s199_s23, 4294966272  ;;  %s225_s26 = sand.u32 1, %s843_s10   ;;  %p492_p8 = scmp.ne.s32.totalorder %s875_s18, 0 }
  0x70   : > { %s1179_s3 = sshll.u32 %s225_s26, 3  ;;  %v898_v0 = vmov (!%p492_p8), 0.0  }
  0x71   : > { %s227_s4 = scalar_lea.vmem [#allocation8], %s1179_s3  ;;  %233 = sbr.rel (%p492_p8) target bundleno = 120 (0x78), region = 40  ;;  %234 = vst [vmem:[#allocation2] sm:$0xff] (!%p492_p8), %v898_v0 }
  0x78 PF: > { %v673_v1 = vld [vmem:[%s1170_s5] sm:$0xff]   ;;  %v899_v2 = vmov 0.0   ;;  %v674_v3 = vld [vmem:[%s1170_s5 + $0x8] sm:$0xff]   ;;  %vm900_vm0 = vmmov 0   ;;  %v675_v4 = vld [vmem:[%s1170_s5 + $0x10] sm:$0xff]   ;;  %p501_p5 = scmp.ne.s32.totalorder %s875_s18, 3 }
  0x79   : > { %516 = vmatprep.subr.bf16.mxu0 %v899_v2  ;;  %532 = vmatprep.mubr.msk.bf16.mxu0 %vm900_vm0, %v899_v2  ;;  %v676_v5 = vld [vmem:[%s1170_s5 + $0x18] sm:$0xff]   ;;  %v677_v6 = vld [vmem:[%s1170_s5 + $0x20] sm:$0xff]   ;;  %v678_v7 = vld [vmem:[%s1170_s5 + $0x28] sm:$0xff]  }
  0x7a   : > { %517 = vmatpush3.bf16.msra.mxu0 %v673_v1  ;;  %v679_v8 = vld [vmem:[%s1170_s5 + $0x30] sm:$0xff]   ;;  %v680_v9 = vld [vmem:[%s1170_s5 + $0x38] sm:$0xff]  }
  0x7b   : > { %518 = vmatprep.subr.bf16.mxu0 %v899_v2  ;;  %v236_v10 = vld [vmem:[%s193_s8] sm:$0xf]  ;;  %v235_v11 = vld [vmem:[#allocation2] sm:$0xff] }
  0x7e   : > { %519 = vmatpush3.bf16.msra.mxu0 %v674_v3 }
  0x7f   : > { %520 = vmatprep.subr.bf16.mxu0 %v899_v2 }
  0x82   : > { %521 = vmatpush3.bf16.msra.mxu0 %v675_v4 }
  0x83   : > { %522 = vmatprep.subr.bf16.mxu0 %v899_v2 }
  0x86   : > { %523 = vmatpush3.bf16.msra.mxu0 %v676_v5 }
  0x87   : > { %524 = vmatprep.subr.bf16.mxu0 %v899_v2 }
  0x8a   : > { %525 = vmatpush3.bf16.msra.mxu0 %v677_v6 }
  0x8b   : > { %526 = vmatprep.subr.bf16.mxu0 %v899_v2 }
  0x8e   : > { %527 = vmatpush3.bf16.msra.mxu0 %v678_v7 }
  0x8f   : > { %528 = vmatprep.subr.bf16.mxu0 %v899_v2 }
  0x92   : > { %529 = vmatpush3.bf16.msra.mxu0 %v679_v8 }
  0x93   : > { %530 = vmatprep.subr.bf16.mxu0 %v899_v2 }
  0x96   : > { %531 = vmatpush3.bf16.msra.mxu0 %v680_v9 }
  0x99   : > { %533 = vmatmul.mubr.bf16.vlgmr.msra.gmra.mrb[0].mxu0 %v236_v10 }
 0x169   : > { %346 = sbr.rel (%p501_p5) target bundleno = 376 (0x178), region = 44 }
 0x16c   : > { %v335_v12 = vpop.f32.mrb[0].mxu0 }
 0x16d   : > { %v341_v13 = vadd.f32 %v335_v12, %v235_v11  ;;  %v534_v14 = vpop.f32.mrb[1].mxu0 }
 0x16e   : > { %v338_v15 = vpop.f32.mrb[2].mxu0 }
 0x16f   : > { %342 = vst [vmem:[#allocation2] sm:$0xff] %v341_v13  ;;  %v535_v16 = vpop.f32.mrb[3].mxu0 }
 0x176   : > { %v347_v17 = vld [vmem:[#allocation2] sm:$0xff] }
 0x177   : > { %348 = vst [vmem:[%s227_s4] sm:$0xff] %v347_v17 }
 0x178 PF: > { %s503_s27 = sshll.u32 %s879_s19, 7  ;;  %s365_s29 = sshll.u32 %s227_s4, 4  ;;  %s366_s29 = int_to_ptr.vmem [resolvable:$true] %s365_s29 }
 0x179   : > { %s1200_s15 = scalar_lea.hbm %s1277_s2, %s503_s27  ;;  %s350_s18 = scalar_lea.sflag [#allocation5], %s225_s26 }
 0x17a   : > { %s741_s28 = scalar_lea.vmem %s366_s29, 128  ;;  %p1307_p2 = scmp.ne.s32.totalorder %s1297_s12, 0 }
 0x17b   : > { %p742_p13 = scmp.ne.s32.totalorder %s366_s29, %s741_s28  ;;  %s901_s17 = smov [#allocation8]  }
 0x17c   : > { %s745_s7 = sshll.u32 %s901_s17, 4  ;;  %s746_s7 = int_to_ptr.vmem [resolvable:$false] %s745_s7 }
 0x17d   : > { %p743_p12 = pnand %p742_p13, %p1307_p2  ;;  %s747_s8 = scalar_lea.vmem %s746_s7, 256 }
 0x17e   : > { %p748_p9 = scmp.lt.s32.totalorder %s366_s29, %s746_s7  ;;  %p749_p0 = scmp.lt.s32.totalorder %s747_s8, %s741_s28 }
 0x17f   : > { %p744_p6 = pneg %p743_p12 }
 0x180   : > { %p750_p4 = por %p749_p0, %p748_p9 }
 0x182   : > { %p751_p7 = pnand %p750_p4, %p744_p6 }
 0x184   : > { %754 = shalt.err (!%p751_p7)
}
 0x185   : > { %s755_s19 = scalar_lea.hbm %s1200_s15, 128  ;;  %s759_s23 = scalar_lea.hbm %s1277_s2, 256 }
 0x186   : > { %p756_p1 = scmp.ne.s32.totalorder %s1200_s15, %s755_s19  ;;  %p760_p11 = scmp.lt.u32.totalorder %s1200_s15, %s1277_s2 }
 0x187   : > { %p761_p8 = scmp.lt.u32.totalorder %s759_s23, %s755_s19  ;;  %p763_p13 = scmp.lt.u32.totalorder %s755_s19, %s1200_s15 }
 0x188   : > { %p757_p3 = pnand %p756_p1, %p1307_p2 }
 0x189   : > { %p762_p5 = por %p761_p8, %p760_p11 }
 0x18a   : > { %p758_p10 = pneg %p757_p3 }
 0x18b   : > { %p764_p12 = por %p763_p13, %p762_p5 }
 0x18d   : > { %p765_p6 = pnand %p764_p12, %p758_p10 }
 0x18f   : > { %768 = shalt.err (!%p765_p6)
}
 0x190   : > { %540 = dma.vmem_to_hbm [thread:$0]  (%p1307_p2), %s366_s29, 128, %s1200_s15, %s350_s18  }
 0x191 PF: > { %p554_p9 = scmp.ge.s32.totalorder %s891_s22, 2  ;;  %s377_s3 = sand.u32 1, %s839_s9  }
 0x192   : > { %p1308_p0 = scmp.ne.s32.totalorder %s1298_s30, 0  ;;  %s378_s4 = scalar_lea.sflag [#allocation5], %s377_s3 }
 0x194   : > { %p550_p4 = pnand %p554_p9, %p1308_p0 }
 0x196   : > { %834 = dma.done.wait (!%p550_p4), %s378_s4, 128  }
 0x197   : > { %836 = vsyncadd (!%p550_p4), %s378_s4, 4294967168  ;;  %s21_s22 = sadd.s32 1, %s891_s22   ;;  %s1310_s21 = sld [smem:[#allocation17_spill]] }
 0x198   : > { %p1228_p7 = scmp.ge.s32.totalorder %s21_s22, 10   ;;  %s1311_s24 = sld [smem:[#allocation12_spill]] }
 0x199   : > { %s1312_s17 = sld [smem:[#allocation16_spill]]  ;;  %s1313_s19 = sld [smem:[#allocation13_spill]] }
 0x19a   : > { %s1314_s30 = sld [smem:[#allocation14_spill]]  ;;  %s1315_s29 = sld [smem:[#allocation15_spill]] }
 0x19b   : > { %s1316_s9 = smov %s843_s10  ;;  %s1317_s10 = smov %s847_s11 }
 0x19c   : > { %s1318_s11 = smov %s1048_s6  ;;  %s1319_s12 = smov %s855_s13 }
 0x19d   : > { %s1320_s13 = smov %s859_s14  ;;  %s1321_s14 = smov %s1310_s21 }
 0x19e   : > { %s1322_s15 = smov %s867_s16  ;;  %s1323_s16 = smov %s1311_s24 }
 0x19f   : > { %s1324_s18 = smov %s883_s20  ;;  %20 = sbr.rel (!%p1228_p7) target bundleno = 14 (0xe), region = 94 }
 0x1a0   : > { %s1325_s20 = smov %s1314_s30  ;;  %s1326_s21 = smov %s1315_s29 }
 0x1a6   :  { %383 = vsyncpa [#allocation4], 1 }
 0x1a7   :  { %385 = vsyncpa [#allocation4 + $0x1], 1 }
 0x1a8   :  { %386 = vsyncpa [#allocation7], 1 }
 0x1a9   :  { %388 = vsyncpa [#allocation7 + $0x1], 1 }
 0x1aa   :  { %389 = vsyncpa [#allocation5], 1 }
 0x1ab   :  { %391 = vsyncpa [#allocation5 + $0x1], 1 }

</bundles_post_ra>
